<compile_context>
chip_gen: v5e
topology: v5e:2x2
jax: 0.10.0
libtpu: 0.0.40
codegen_flags: <defaults>
</compile_context>

<pallas_src>
import jax
import jax.numpy as jnp
from jax.experimental import pallas as pl
from jax.experimental.pallas import tpu as pltpu


# ---------------------------------------------------------------------------
# AdaptiveStdMeanPool1d kernel
# ---------------------------------------------------------------------------
def _std_mean_pool_kernel(x_ref, o_ref):
    # x_ref: (TR, T) rows of the flattened (B*C, T) input.
    # o_ref: (TR, 2) -- column 0 = unbiased std, column 1 = mean.
    x = x_ref[...].astype(jnp.float32)
    t = x.shape[-1]

    # Mean over the (lane-resident) time axis.
    mean = jnp.sum(x, axis=-1, keepdims=True) * jnp.float32(1.0 / t)      # (TR, 1)

    # Two-pass unbiased variance; the square is fused into the reduction so no
    # second full-size (TR, T) temporary is bound next to the upcast copy of x.
    ssq = jnp.sum(jnp.square(x - mean), axis=-1, keepdims=True)           # (TR, 1)
    # Bessel divisor (T-1) matches torch.std_mean; T == 1 yields NaN like torch.
    std = jnp.sqrt(ssq / jnp.float32(t - 1))

    # Two slice stores; no in-kernel concatenate / lane shuffles.
    o_ref[:, 0:1] = std.astype(o_ref.dtype)
    o_ref[:, 1:2] = mean.astype(o_ref.dtype)


def _choose_row_tile(n_rows, t):
    """~2 MiB f32 input block per grid step (double-buffered by the pipeline),
    multiple of 8 sublanes, capped for reasonable grid granularity."""
    target_bytes = 2 * 1024 * 1024
    rows = target_bytes // max(4 * t, 1)
    rows = min(max(rows, 8), 4096)
    rows -= rows % 8
    if rows >= n_rows:
        return n_rows
    return max(rows, 8)


def adaptive_std_mean_pool1d(x, *, row_tile=None):
    """torch.cat(torch.std_mean(x, dim=2), dim=1) for x of shape (B, C, T)."""
    B, C, T = x.shape
    R = B * C
    xf = x.reshape(R, T)                               # row index = b * C + c

    if row_tile is None:
        tr = _choose_row_tile(R, T)
    else:
        tr = min(int(row_tile), R)
    if tr < R:
        tr = max(8, tr - tr % 8)                       # (8, 128) block-shape rule
    else:
        tr = R                                         # single full-extent block

    itemsize = x.dtype.itemsize
    cost = pl.CostEstimate(
        flops=4 * R * T,                               # sum, sub, square, sum
        transcendentals=0,
        bytes_accessed=(R * T + 2 * R) * itemsize,
    )

    out = pl.pallas_call(
        _std_mean_pool_kernel,
        out_shape=jax.ShapeDtypeStruct((R, 2), x.dtype),
        grid=(pl.cdiv(R, tr),),
        in_specs=[pl.BlockSpec((tr, T), lambda i: (i, 0))],
        out_specs=pl.BlockSpec((tr, 2), lambda i: (i, 0)),
        compiler_params=pltpu.CompilerParams(
            dimension_semantics=("parallel",),          # shard rows across TCs (v7x)
            vmem_limit_bytes=32 * 1024 * 1024,          # portable v5e/v6e/v7x budget
        ),
        cost_estimate=cost,
    )(xf)
    # NOTE: for extremely large T (an (8, T) f32 block exceeding VMEM) add a
    # trailing "arbitrary" grid axis over T with sum / sum-of-squares scratch
    # accumulators; not needed at these sizes.

    # Wrapper-side layout plumbing: (R, 2) -> (B, C, 2) -> (B, 2, C) -> (B, 2C)
    # giving [std_0..std_{C-1}, mean_0..mean_{C-1}] like torch.cat(dim=1).
    return out.reshape(B, C, 2).transpose(0, 2, 1).reshape(B, 2 * C)


# ---------------------------------------------------------------------------
# Linear classifier kernel
# ---------------------------------------------------------------------------
def _linear_kernel(x_ref, w_ref, b_ref, o_ref):
    x = x_ref[...].astype(jnp.float32)
    w = w_ref[...].astype(jnp.float32)
    b = b_ref[...].astype(jnp.float32)
    y = jnp.dot(x, w, preferred_element_type=jnp.float32) + b
    o_ref[...] = y.astype(o_ref.dtype)


def linear_classifier(x, w, b):
    """x @ w + b with x: (B, F), w: (F, O), b: (O,)."""
    B, F = x.shape
    Fw, O = w.shape
    assert F == Fw
    tb = B if B <= 256 else 256                        # batch tile (256 % 8 == 0)
    b2 = b.reshape(1, O)
    return pl.pallas_call(
        _linear_kernel,
        out_shape=jax.ShapeDtypeStruct((B, O), x.dtype),
        grid=(pl.cdiv(B, tb),),
        in_specs=[
            pl.BlockSpec((tb, F), lambda i: (i, 0)),
            pl.BlockSpec((F, O), lambda i: (0, 0)),
            pl.BlockSpec((1, O), lambda i: (0, 0)),
        ],
        out_specs=pl.BlockSpec((tb, O), lambda i: (i, 0)),
        compiler_params=pltpu.CompilerParams(dimension_semantics=("parallel",)),
    )(x, w, b2)


# ---------------------------------------------------------------------------
# MPathModel forward
# ---------------------------------------------------------------------------
class MPathModelPallas:
    """JAX/Pallas port of MPathModel.forward: run every path on x, concatenate
    along dim=1, flatten, then apply the classifier."""

    def __init__(self, paths, classifier_w, classifier_b):
        # TODO(synk): the per-path conv/BN/activation stacks of as_dnn are
        # arbitrary constructor-supplied nn.Modules; each path is represented
        # here by its terminal AdaptiveStdMeanPool1d Pallas kernel.
        self.paths = list(paths)
        self.w = classifier_w
        self.b = classifier_b

    def __call__(self, x):
        outputs = [path(x) for path in self.paths]
        out = jnp.concatenate(outputs, axis=1)          # torch.cat(dim=1)
        out = out.reshape(out.shape[0], -1)             # .view(B, -1)
        return linear_classifier(out, self.w, self.b)   # self.classifier(out)


# ---------------------------------------------------------------------------
# Pure-JAX references
# ---------------------------------------------------------------------------
def _reference_pool(x):
    mean = jnp.mean(x, axis=2)
    var = jnp.sum((x - mean[..., None]) ** 2, axis=2) / (x.shape[2] - 1)
    std = jnp.sqrt(var)
    return jnp.concatenate([std, mean], axis=1)


def _reference_model(x, num_paths, w, b):
    pooled = _reference_pool(x)
    feats = jnp.concatenate([pooled] * num_paths, axis=1)
    return feats @ w + b


if __name__ == "__main__":
    key = jax.random.PRNGKey(0)
    k_x, k_w, k_b, k_x2 = jax.random.split(key, 4)

    # MPathModel: 3 paths over (B, C, T) features -> cat -> flatten -> Linear.
    B, C, T = 2, 4, 16
    num_paths = 3
    n_classes = 2
    x = jax.random.normal(k_x, (B, C, T), dtype=jnp.float32)
    w = 0.1 * jax.random.normal(k_w, (num_paths * 2 * C, n_classes), dtype=jnp.float32)
    b = 0.1 * jax.random.normal(k_b, (n_classes,), dtype=jnp.float32)

    # Tight check on the pooling kernel itself.
    pooled_small = jax.block_until_ready(adaptive_std_mean_pool1d(x))
    assert pooled_small.shape == (B, 2 * C), pooled_small.shape
    assert jnp.allclose(pooled_small, _reference_pool(x), atol=1e-5, rtol=1e-5), \
        "pool mismatch vs reference"

    # Full MPathModel forward (looser tolerance: MXU matmul precision).
    model = MPathModelPallas([adaptive_std_mean_pool1d] * num_paths, w, b)
    out = jax.block_until_ready(model(x))
    ref = _reference_model(x, num_paths, w, b)
    assert out.shape == (B, n_classes), out.shape
    assert jnp.allclose(out, ref, atol=1e-2, rtol=1e-2), "model mismatch vs reference"

    # Exercise the multi-block, pipelined path of the pooling kernel.
    B2, C2, T2 = 4, 16, 256                      # 64 rows, row_tile=16 -> grid of 4
    x2 = jax.random.normal(k_x2, (B2, C2, T2), dtype=jnp.float32)
    pooled = jax.block_until_ready(adaptive_std_mean_pool1d(x2, row_tile=16))
    assert pooled.shape == (B2, 2 * C2), pooled.shape
    assert jnp.allclose(pooled, _reference_pool(x2), atol=1e-4, rtol=1e-4), \
        "tiled pool mismatch vs reference"

    print("KERNEL_OK")
</pallas_src>

<mosaic_0001>
module attributes {stable_mosaic.version = 11 : i64} {
  func.func @_std_mean_pool_kernel(%arg0: i32, %arg1: memref<8x16xf32, #tpu.memory_space<vmem>>, %arg2: memref<8x2xf32, #tpu.memory_space<vmem>>) attributes {dimension_semantics = [#tpu.dimension_semantics<parallel>], iteration_bounds = array<i64: 1>, scalar_prefetch = 0 : i64, scratch_operands = 0 : i64, tpu.core_type = #tpu.core_type<tc>, window_params = [{transform_indices = @transform_0, window_bounds = array<i64: 8, 16>}, {transform_indices = @transform_1, window_bounds = array<i64: 8, 2>}]} {
    %c0 = arith.constant 0 : index
    %c0_0 = arith.constant 0 : index
    %0 = vector.load %arg1[%c0, %c0_0] : memref<8x16xf32, #tpu.memory_space<vmem>>, vector<8x16xf32>
    %cst = arith.constant dense<0.000000e+00> : vector<8xf32>
    %1 = vector.multi_reduction <add>, %0, %cst [1] : vector<8x16xf32> to vector<8xf32>
    %2 = vector.shape_cast %1 : vector<8xf32> to vector<8x1xf32>
    %cst_1 = arith.constant 6.250000e-02 : f32
    %3 = vector.broadcast %cst_1 : f32 to vector<8x1xf32>
    %4 = arith.mulf %2, %3 : vector<8x1xf32>
    %5 = vector.broadcast %4 : vector<8x1xf32> to vector<8x16xf32>
    %6 = arith.subf %0, %5 : vector<8x16xf32>
    %7 = arith.mulf %6, %6 : vector<8x16xf32>
    %cst_2 = arith.constant dense<0.000000e+00> : vector<8xf32>
    %8 = vector.multi_reduction <add>, %7, %cst_2 [1] : vector<8x16xf32> to vector<8xf32>
    %9 = vector.shape_cast %8 : vector<8xf32> to vector<8x1xf32>
    %cst_3 = arith.constant 1.500000e+01 : f32
    %10 = vector.broadcast %cst_3 : f32 to vector<8x1xf32>
    %11 = arith.divf %9, %10 : vector<8x1xf32>
    %12 = math.sqrt %11 : vector<8x1xf32>
    %c0_4 = arith.constant 0 : index
    %c0_5 = arith.constant 0 : index
    %13 = vector.load %arg2[%c0_4, %c0_5] : memref<8x2xf32, #tpu.memory_space<vmem>>, vector<8x1xf32>
    tpu.vector_store %arg2[%c0_4, %c0_5], %12 {strides = array<i32>} : memref<8x2xf32, #tpu.memory_space<vmem>>, vector<8x1xf32>,
    %c0_6 = arith.constant 0 : index
    %c1 = arith.constant 1 : index
    %14 = vector.load %arg2[%c0_6, %c1] : memref<8x2xf32, #tpu.memory_space<vmem>>, vector<8x1xf32>
    tpu.vector_store %arg2[%c0_6, %c1], %4 {strides = array<i32>} : memref<8x2xf32, #tpu.memory_space<vmem>>, vector<8x1xf32>,
    return
  }
  func.func @transform_0(%arg0: i32) -> (i32, i32) {
    %c0_i32 = arith.constant 0 : i32
    %c0_i32_0 = arith.constant 0 : i32
    return %arg0, %c0_i32 : i32, i32
  }
  func.func @transform_1(%arg0: i32) -> (i32, i32) {
    %c0_i32 = arith.constant 0 : i32
    %c0_i32_0 = arith.constant 0 : i32
    return %arg0, %c0_i32 : i32, i32
  }
}

</mosaic_0001>

<bundles_post_ra>
// kernel: tpu_custom_call.1
= control target key start
LH: loop header
LB: loop body
LE: loop exit
PB: predicated region body
PF: predicated region fallthrough
CT: control target
= control target key end

     0   :  { %6 = vsyncpa [#allocation3], 0  ;;  %s94_s9 = smov [#allocation2]   ;;  %s115_s0 = inlined_call_operand.hbm [shape: f32[8,16], index: 0, kind: input, shape index: {}]   ;;  %s116_s1 = inlined_call_operand.vmem [shape: f32[8,2], index: 1, kind: output, shape index: {}]  }
   0x1   :  { %s12_s8 = sshll.u32 %s115_s0, 4  ;;  %s14_s10 = sshll.u32 %s94_s9, 4  ;;  %s13_s8 = int_to_ptr.hbm [resolvable:$true] %s12_s8  ;;  %s15_s10 = int_to_ptr.vmem [resolvable:$true] %s14_s10 }
   0x2   :  { %17 = dma.hbm_to_vmem [thread:$0]  %s13_s8, 128, %s15_s10, [#allocation3]  }
   0x3   :  { %92 = dma.done.wait [#allocation3], 128  }
   0x4   :  { %93 = vsyncadd [#allocation3], 4294967168  ;;  %vm23_vm0 = vcmask 130048   ;;  %v22_v0 = vld [vmem:[#allocation2] sm:$0xff]  ;;  %v95_v7 = vmov 15.0   ;;  %vm53_vm2 = vcmask 7168  }
   0x5   :  { %v24_v1 = vsel %vm23_vm0, %v22_v0, 0.0  ;;  %64 = vrcp.f32 %v95_v7  ;;  %vm55_vm4 = vcmask 15368  }
   0x6   :  { %25 = vadd.xlane.f32.xlu0 %v24_v1 }
   0xb   :  { %v65_v8 = vpop.eup %64 }
   0xc   :  { %v34_v9 = vmul.f32 15.0, %v65_v8  ;;  %vm38_vm1 = vweird.f32 %v65_v8 }
   0xe   :  { %v35_v10 = vsub.f32 1.0, %v34_v9 }
  0x10   :  { %v36_v11 = vmul.f32 %v65_v8, %v35_v10 }
  0x12   :  { %v37_v12 = vadd.f32 %v65_v8, %v36_v11 }
  0x14   :  { %v39_v13 = vsel %vm38_vm1, %v65_v8, %v37_v12 }
  0x79   :  { %v26_v2 = vpop.xlane.xlu0 %25 }
  0x7a   :  { %v27_v3 = vmul.f32 0.0625, %v26_v2 }
  0x7c   :  { %v28_v4 = vsub.f32 %v22_v0, %v27_v3 }
  0x7e   :  { %v29_v5 = vmul.f32 %v28_v4, %v28_v4 }
  0x80   :  { %v30_v6 = vsel %vm23_vm0, %v29_v5, 0.0 }
  0x81   :  { %31 = vadd.xlane.f32.xlu0 %v30_v6 }
  0xf4   :  { %v32_v14 = vpop.xlane.xlu0 %31 }
  0xf5   :  { %v40_v15 = vmul.f32 %v39_v13, %v32_v14 }
  0xf7   :  { %66 = vrsqrt.f32 %v40_v15  ;;  %vm48_vm3 = vcmp.eq.f32.partialorder %v40_v15, inf  ;;  %v51_v23 = vand.u32 2147483648, %v40_v15  ;;  %vm50_vm5 = vcmp.eq.f32.partialorder %v40_v15, 0.0 }
  0xfd   :  { %v67_v16 = vpop.eup %66 }
  0xfe   :  { %v42_v17 = vmul.f32 %v67_v16, %v40_v15 }
 0x100   :  { %v43_v18 = vmul.f32 %v67_v16, %v42_v17 }
 0x102   :  { %v44_v19 = vmul.f32 0.5, %v43_v18 }
 0x104   :  { %v45_v20 = vsub.f32 1.5, %v44_v19 }
 0x106   :  { %v46_v21 = vmul.f32 %v67_v16, %v45_v20 }
 0x108   :  { %v47_v22 = vmul.f32 %v46_v21, %v40_v15 }
 0x10a   :  { %v49_v24 = vsel %vm48_vm3, %v40_v15, %v47_v22 }
 0x10b   :  { %v52_v25 = vsel %vm50_vm5, %v51_v23, %v49_v24 }
 0x10c   :  { %54 = vst.msk [vmem:[%s116_s1] sm:$0xff] %vm53_vm2, %v52_v25 }
 0x10d   :  { %56 = vst.msk [vmem:[%s116_s1] sm:$0xff] %vm55_vm4, %v27_v3 }
 0x10e   :  { %61 = vsyncpa [#allocation3], 1 }

</bundles_post_ra>
